<compile_context>
chip_gen: v6e
topology: v6e:2x2x1
jax: 0.10.0
libtpu: 0.0.40
codegen_flags: <defaults>
</compile_context>

<pallas_src>
import jax
import jax.numpy as jnp
from jax import lax
from jax.experimental import pallas as pl
from jax.experimental.pallas import tpu as pltpu


def _cdiv(a, b):
    return (a + b - 1) // b


def _conv3x3_bn_relu_kernel(y_ref, w_ref, scale_ref, bias_ref, o_ref):
    # y_ref:     (th+1, Wo+1, 4*Cin) bf16  space-to-depth input slab (+1 row/col halo)
    # w_ref:     (4, 4*Cin, Cout)    bf16  per-shift weight matrices (VMEM resident)
    # scale_ref: (1, Cout) f32, bias_ref: (1, Cout) f32  (eval-mode BatchNorm, folded)
    # o_ref:     (th, Wo, Cout) output tile
    th, wo, _ = o_ref.shape
    scale = scale_ref[...]
    bias = bias_ref[...]
    w00 = w_ref[0]   # taps (0,0),(0,1),(1,0),(1,1)
    w01 = w_ref[1]   # taps (0,2),(1,2)   (unused phases are zero rows)
    w10 = w_ref[2]   # taps (2,0),(2,1)
    w11 = w_ref[3]   # tap  (2,2)

    def row(r, carry):
        # Four shifted views of the space-to-depth slab cover all 9 conv taps.
        ya = y_ref[r, 0:wo, :]            # (Wo, 4*Cin)
        yb = y_ref[r, 1:wo + 1, :]
        yc = y_ref[r + 1, 0:wo, :]
        yd = y_ref[r + 1, 1:wo + 1, :]
        acc = jnp.dot(ya, w00, preferred_element_type=jnp.float32)
        acc = acc + jnp.dot(yb, w01, preferred_element_type=jnp.float32)
        acc = acc + jnp.dot(yc, w10, preferred_element_type=jnp.float32)
        acc = acc + jnp.dot(yd, w11, preferred_element_type=jnp.float32)
        # f32 epilogue: BN scale/bias + ReLU (scale not baked into bf16 weights).
        o_ref[r] = jnp.maximum(acc * scale + bias, 0.0).astype(o_ref.dtype)
        return carry

    lax.fori_loop(0, th, row, 0)


def basic_conv3x3(x_nchw, conv_w, bn_gamma, bn_beta, bn_mean, bn_var,
                  *, stride=2, padding=1, eps=1e-5, tile_rows=32):
    assert stride == 2 and conv_w.shape[2:] == (3, 3), \
        "kernel specialised to 3x3 / stride-2 (Basic_Conv3x3 defaults)"
    N, Cin, H, W = x_nchw.shape
    Cout = conv_w.shape[0]
    Ho = (H + 2 * padding - 3) // stride + 1
    Wo = (W + 2 * padding - 3) // stride + 1
    C4 = 4 * Cin

    # Row-tile size: large tiles amortise per-step overhead; keep >=2 grid programs
    # whenever possible so the grid can be sharded across both v7x TensorCores.
    th = max(1, min(tile_rows, Ho))
    if N * _cdiv(Ho, th) < 2 and Ho >= 2:
        th = _cdiv(Ho, 2)
    n_rt = _cdiv(Ho, th)
    Hy = n_rt * th + 1           # space-to-depth rows incl. bottom halo / row padding
    Wy = Wo + 1                  # space-to-depth cols incl. right halo

    # ---- glue (gather-style XLA fusion, ~0.5x input bytes): NCHW f32 ->
    #      padded NHWC bf16 -> 2x2 space-to-depth -> halo-duplicated row tiles ----
    x = jnp.transpose(x_nchw, (0, 2, 3, 1)).astype(jnp.bfloat16)
    pad_b = 2 * Hy - H - padding
    pad_r = 2 * Wy - W - padding
    xp = jnp.pad(x, ((0, 0), (padding, pad_b), (padding, pad_r), (0, 0)))
    y = xp.reshape(N, Hy, 2, Wy, 2, Cin).transpose(0, 1, 3, 2, 4, 5)
    y = y.reshape(N, Hy, Wy, C4)          # y[n, r, c, (ph*2+pw)*Cin+ci] = xp[n, 2r+ph, 2c+pw, ci]
    y_t = jnp.concatenate(
        [y[:, i * th:i * th + th + 1][:, None] for i in range(n_rt)], axis=1)
    y_t = y_t.reshape(N * n_rt, th + 1, Wy, C4)

    # ---- weights: (Cout, Cin, 3, 3) -> four (4*Cin, Cout) matrices, one per
    #      space-to-depth shift; unused phase rows are zero. ----
    wk = jnp.transpose(conv_w, (2, 3, 1, 0)).astype(jnp.float32)   # (kh, kw, Cin, Cout)
    zero = jnp.zeros((Cin, Cout), jnp.float32)

    def stack_phases(tap):
        return jnp.concatenate(
            [tap(ph, pw) for ph in range(2) for pw in range(2)], axis=0)

    w_a = stack_phases(lambda ph, pw: wk[ph, pw])
    w_b = stack_phases(lambda ph, pw: wk[ph, 2] if pw == 0 else zero)
    w_c = stack_phases(lambda ph, pw: wk[2, pw] if ph == 0 else zero)
    w_d = stack_phases(lambda ph, pw: wk[2, 2] if (ph == 0 and pw == 0) else zero)
    w_all = jnp.stack([w_a, w_b, w_c, w_d], axis=0).astype(jnp.bfloat16)

    scale = (bn_gamma / jnp.sqrt(bn_var + eps)).astype(jnp.float32).reshape(1, Cout)
    bias = (bn_beta - bn_mean * scale[0]).astype(jnp.float32).reshape(1, Cout)

    # ---- generation-aware VMEM budget (headroom below physical capacity) ----
    out_itemsize = jnp.dtype(x_nchw.dtype).itemsize
    est = (2 * (th + 1) * Wy * C4 * 2            # double-buffered input slabs (bf16)
           + 4 * C4 * Cout * 2                   # resident weights (bf16)
           + 2 * th * Wo * Cout * out_itemsize   # double-buffered output tiles
           + 4 * Cout * 4)                       # scale / bias
    try:
        phys = int(pltpu.get_tpu_info().vmem_capacity_bytes)
    except Exception:
        phys = 64 * 1024 * 1024                  # v7x per-TensorCore (most restrictive)
    cap = int(phys * 0.72)                       # ~46 MiB on v7x, ~92 MiB on v5e/v6e
    vmem_limit = int(min(max(2 * est, 32 * 1024 * 1024), cap))

    out = pl.pallas_call(
        _conv3x3_bn_relu_kernel,
        out_shape=jax.ShapeDtypeStruct((N * n_rt, th, Wo, Cout), x_nchw.dtype),
        grid=(N * n_rt,),
        in_specs=[
            pl.BlockSpec((None, th + 1, Wy, C4), lambda g: (g, 0, 0, 0)),  # input slab
            pl.BlockSpec((4, C4, Cout), lambda g: (0, 0, 0)),              # resident weights
            pl.BlockSpec((1, Cout), lambda g: (0, 0)),                     # BN scale
            pl.BlockSpec((1, Cout), lambda g: (0, 0)),                     # BN bias
        ],
        out_specs=pl.BlockSpec((None, th, Wo, Cout), lambda g: (g, 0, 0, 0)),
        compiler_params=pltpu.CompilerParams(
            dimension_semantics=("parallel",),
            vmem_limit_bytes=vmem_limit),
    )(y_t, w_all, scale, bias)

    out = out.reshape(N, n_rt * th, Wo, Cout)[:, :Ho]
    # TODO(synk): NHWC / bf16 consumers could take `out` directly and skip this
    #             final transpose (saves ~2x of the output-side HBM traffic).
    return jnp.transpose(out, (0, 3, 1, 2))      # back to NCHW, dtype of x


def _reference(x_nchw, conv_w, gamma, beta, mean, var, eps=1e-5):
    y = lax.conv_general_dilated(
        x_nchw, conv_w, window_strides=(2, 2), padding=((1, 1), (1, 1)),
        dimension_numbers=("NCHW", "OIHW", "NCHW"))
    s = gamma / jnp.sqrt(var + eps)
    b = beta - mean * s
    y = y * s[None, :, None, None] + b[None, :, None, None]
    return jnp.maximum(y, 0.0)


if __name__ == "__main__":
    N, Cin, H, W, Cout = 2, 4, 16, 16, 8

    key = jax.random.PRNGKey(0)
    k1, k2, k3, k4, k5, k6 = jax.random.split(key, 6)
    x = jax.random.normal(k1, (N, Cin, H, W), jnp.float32)
    # deterministic synthetic parameters (shapes from Basic_Conv3x3.__init__)
    conv_w = jax.random.normal(k2, (Cout, Cin, 3, 3), jnp.float32) * 0.1
    bn_gamma = 1.0 + 0.1 * jax.random.normal(k3, (Cout,), jnp.float32)
    bn_beta = 0.1 * jax.random.normal(k4, (Cout,), jnp.float32)
    bn_mean = 0.1 * jax.random.normal(k5, (Cout,), jnp.float32)
    bn_var = jax.random.uniform(k6, (Cout,), jnp.float32, minval=0.5, maxval=1.5)

    conv_fn = jax.jit(basic_conv3x3)
    out = conv_fn(x, conv_w, bn_gamma, bn_beta, bn_mean, bn_var)
    out = jax.block_until_ready(out)

    ref = _reference(x, conv_w, bn_gamma, bn_beta, bn_mean, bn_var)
    assert out.shape == (N, Cout, H // 2, W // 2), out.shape
    # bf16 operands with f32 accumulation + f32 BN epilogue vs. f32 reference.
    err = float(jnp.max(jnp.abs(out - ref)))
    assert jnp.allclose(out, ref, atol=2e-2, rtol=2e-2), err
    print("KERNEL_OK")
</pallas_src>

<mosaic_0001>
module attributes {stable_mosaic.version = 11 : i64} {
  func.func @_conv3x3_bn_relu_kernel(%arg0: i32, %arg1: memref<1x9x9x16xbf16, #tpu.memory_space<vmem>>, %arg2: memref<4x16x8xbf16, #tpu.memory_space<vmem>>, %arg3: memref<1x8xf32, #tpu.memory_space<vmem>>, %arg4: memref<1x8xf32, #tpu.memory_space<vmem>>, %arg5: memref<1x8x8x8xf32, #tpu.memory_space<vmem>>) attributes {dimension_semantics = [#tpu.dimension_semantics<parallel>], iteration_bounds = array<i64: 2>, scalar_prefetch = 0 : i64, scratch_operands = 0 : i64, tpu.core_type = #tpu.core_type<tc>, window_params = [{transform_indices = @transform_0, window_bounds = array<i64: 1, 9, 9, 16>}, {pipeline_mode = #tpu.pipeline_mode<synchronous>, transform_indices = @transform_1, window_bounds = array<i64: 4, 16, 8>}, {pipeline_mode = #tpu.pipeline_mode<synchronous>, transform_indices = @transform_2, window_bounds = array<i64: 1, 8>}, {pipeline_mode = #tpu.pipeline_mode<synchronous>, transform_indices = @transform_3, window_bounds = array<i64: 1, 8>}, {transform_indices = @transform_4, window_bounds = array<i64: 1, 8, 8, 8>}]} {
    %c0 = arith.constant 0 : index
    %c0_0 = arith.constant 0 : index
    %0 = vector.load %arg3[%c0, %c0_0] : memref<1x8xf32, #tpu.memory_space<vmem>>, vector<1x8xf32>
    %c0_1 = arith.constant 0 : index
    %c0_2 = arith.constant 0 : index
    %1 = vector.load %arg4[%c0_1, %c0_2] : memref<1x8xf32, #tpu.memory_space<vmem>>, vector<1x8xf32>
    %c0_3 = arith.constant 0 : index
    %c0_4 = arith.constant 0 : index
    %c0_5 = arith.constant 0 : index
    %2 = vector.load %arg2[%c0_3, %c0_4, %c0_5] : memref<4x16x8xbf16, #tpu.memory_space<vmem>>, vector<1x16x8xbf16>
    %3 = vector.shape_cast %2 : vector<1x16x8xbf16> to vector<16x8xbf16>
    %c1 = arith.constant 1 : index
    %c0_6 = arith.constant 0 : index
    %c0_7 = arith.constant 0 : index
    %4 = vector.load %arg2[%c1, %c0_6, %c0_7] : memref<4x16x8xbf16, #tpu.memory_space<vmem>>, vector<1x16x8xbf16>
    %5 = vector.shape_cast %4 : vector<1x16x8xbf16> to vector<16x8xbf16>
    %c2 = arith.constant 2 : index
    %c0_8 = arith.constant 0 : index
    %c0_9 = arith.constant 0 : index
    %6 = vector.load %arg2[%c2, %c0_8, %c0_9] : memref<4x16x8xbf16, #tpu.memory_space<vmem>>, vector<1x16x8xbf16>
    %7 = vector.shape_cast %6 : vector<1x16x8xbf16> to vector<16x8xbf16>
    %c3 = arith.constant 3 : index
    %c0_10 = arith.constant 0 : index
    %c0_11 = arith.constant 0 : index
    %8 = vector.load %arg2[%c3, %c0_10, %c0_11] : memref<4x16x8xbf16, #tpu.memory_space<vmem>>, vector<1x16x8xbf16>
    %9 = vector.shape_cast %8 : vector<1x16x8xbf16> to vector<16x8xbf16>
    %c0_i32 = arith.constant 0 : i32
    %c8_i32 = arith.constant 8 : i32
    %10 = arith.addi %c0_i32, %c8_i32 : i32
    %c1_i32 = arith.constant 1 : i32
    scf.for %arg6 = %c0_i32 to %10 step %c1_i32  : i32 {
      %c0_13 = arith.constant 0 : index
      %11 = arith.index_cast %arg6 : i32 to index
      %c0_14 = arith.constant 0 : index
      %c0_15 = arith.constant 0 : index
      %12 = vector.load %arg1[%c0_13, %11, %c0_14, %c0_15] : memref<1x9x9x16xbf16, #tpu.memory_space<vmem>>, vector<1x1x8x16xbf16>
      %13 = vector.shape_cast %12 : vector<1x1x8x16xbf16> to vector<8x16xbf16>
      %c0_16 = arith.constant 0 : index
      %14 = arith.index_cast %arg6 : i32 to index
      %c1_17 = arith.constant 1 : index
      %c0_18 = arith.constant 0 : index
      %15 = vector.load %arg1[%c0_16, %14, %c1_17, %c0_18] : memref<1x9x9x16xbf16, #tpu.memory_space<vmem>>, vector<1x1x8x16xbf16>
      %16 = vector.shape_cast %15 : vector<1x1x8x16xbf16> to vector<8x16xbf16>
      %c1_i32_19 = arith.constant 1 : i32
      %17 = arith.addi %arg6, %c1_i32_19 : i32
      %c0_20 = arith.constant 0 : index
      %18 = arith.index_cast %17 : i32 to index
      %c0_21 = arith.constant 0 : index
      %c0_22 = arith.constant 0 : index
      %19 = vector.load %arg1[%c0_20, %18, %c0_21, %c0_22] : memref<1x9x9x16xbf16, #tpu.memory_space<vmem>>, vector<1x1x8x16xbf16>
      %20 = vector.shape_cast %19 : vector<1x1x8x16xbf16> to vector<8x16xbf16>
      %c1_i32_23 = arith.constant 1 : i32
      %21 = arith.addi %arg6, %c1_i32_23 : i32
      %c0_24 = arith.constant 0 : index
      %22 = arith.index_cast %21 : i32 to index
      %c1_25 = arith.constant 1 : index
      %c0_26 = arith.constant 0 : index
      %23 = vector.load %arg1[%c0_24, %22, %c1_25, %c0_26] : memref<1x9x9x16xbf16, #tpu.memory_space<vmem>>, vector<1x1x8x16xbf16>
      %24 = vector.shape_cast %23 : vector<1x1x8x16xbf16> to vector<8x16xbf16>
      %cst = arith.constant dense<0.000000e+00> : vector<8x8xf32>
      %25 = tpu.matmul %13, %3, %cst {dimension_numbers = #tpu.dot_dimension_numbers<[1], [0], [0], [1], [0, 0, 1, 1], [], []>} : vector<8x16xbf16>, vector<16x8xbf16>, vector<8x8xf32> -> vector<8x8xf32>
      %cst_27 = arith.constant dense<0.000000e+00> : vector<8x8xf32>
      %26 = tpu.matmul %16, %5, %cst_27 {dimension_numbers = #tpu.dot_dimension_numbers<[1], [0], [0], [1], [0, 0, 1, 1], [], []>} : vector<8x16xbf16>, vector<16x8xbf16>, vector<8x8xf32> -> vector<8x8xf32>
      %27 = arith.addf %25, %26 : vector<8x8xf32>
      %cst_28 = arith.constant dense<0.000000e+00> : vector<8x8xf32>
      %28 = tpu.matmul %20, %7, %cst_28 {dimension_numbers = #tpu.dot_dimension_numbers<[1], [0], [0], [1], [0, 0, 1, 1], [], []>} : vector<8x16xbf16>, vector<16x8xbf16>, vector<8x8xf32> -> vector<8x8xf32>
      %29 = arith.addf %27, %28 : vector<8x8xf32>
      %cst_29 = arith.constant dense<0.000000e+00> : vector<8x8xf32>
      %30 = tpu.matmul %24, %9, %cst_29 {dimension_numbers = #tpu.dot_dimension_numbers<[1], [0], [0], [1], [0, 0, 1, 1], [], []>} : vector<8x16xbf16>, vector<16x8xbf16>, vector<8x8xf32> -> vector<8x8xf32>
      %31 = arith.addf %29, %30 : vector<8x8xf32>
      %32 = vector.broadcast %0 : vector<1x8xf32> to vector<8x8xf32>
      %33 = arith.mulf %31, %32 : vector<8x8xf32>
      %34 = vector.broadcast %1 : vector<1x8xf32> to vector<8x8xf32>
      %35 = arith.addf %33, %34 : vector<8x8xf32>
      %cst_30 = arith.constant 0.000000e+00 : f32
      %36 = vector.broadcast %cst_30 : f32 to vector<8x8xf32>
      %37 = arith.maximumf %35, %36 : vector<8x8xf32>
      %c0_31 = arith.constant 0 : index
      %38 = arith.index_cast %arg6 : i32 to index
      %c0_32 = arith.constant 0 : index
      %c0_33 = arith.constant 0 : index
      %39 = vector.load %arg5[%c0_31, %38, %c0_32, %c0_33] : memref<1x8x8x8xf32, #tpu.memory_space<vmem>>, vector<1x1x8x8xf32>
      %40 = vector.shape_cast %39 : vector<1x1x8x8xf32> to vector<8x8xf32>
      %41 = vector.shape_cast %37 : vector<8x8xf32> to vector<1x1x8x8xf32>
      tpu.vector_store %arg5[%c0_31, %38, %c0_32, %c0_33], %41 {strides = array<i32>} : memref<1x8x8x8xf32, #tpu.memory_space<vmem>>, vector<1x1x8x8xf32>,
    }
    %c8_i32_12 = arith.constant 8 : i32
    return
  }
  func.func @transform_0(%arg0: i32) -> (i32, i32, i32, i32) {
    %c0_i32 = arith.constant 0 : i32
    %c0_i32_0 = arith.constant 0 : i32
    %c0_i32_1 = arith.constant 0 : i32
    %c0_i32_2 = arith.constant 0 : i32
    return %arg0, %c0_i32, %c0_i32_0, %c0_i32_1 : i32, i32, i32, i32
  }
  func.func @transform_1(%arg0: i32) -> (i32, i32, i32) {
    %c0_i32 = arith.constant 0 : i32
    %c0_i32_0 = arith.constant 0 : i32
    %c0_i32_1 = arith.constant 0 : i32
    %c0_i32_2 = arith.constant 0 : i32
    return %c0_i32, %c0_i32_0, %c0_i32_1 : i32, i32, i32
  }
  func.func @transform_2(%arg0: i32) -> (i32, i32) {
    %c0_i32 = arith.constant 0 : i32
    %c0_i32_0 = arith.constant 0 : i32
    %c0_i32_1 = arith.constant 0 : i32
    return %c0_i32, %c0_i32_0 : i32, i32
  }
  func.func @transform_3(%arg0: i32) -> (i32, i32) {
    %c0_i32 = arith.constant 0 : i32
    %c0_i32_0 = arith.constant 0 : i32
    %c0_i32_1 = arith.constant 0 : i32
    return %c0_i32, %c0_i32_0 : i32, i32
  }
  func.func @transform_4(%arg0: i32) -> (i32, i32, i32, i32) {
    %c0_i32 = arith.constant 0 : i32
    %c0_i32_0 = arith.constant 0 : i32
    %c0_i32_1 = arith.constant 0 : i32
    %c0_i32_2 = arith.constant 0 : i32
    return %arg0, %c0_i32, %c0_i32_0, %c0_i32_1 : i32, i32, i32, i32
  }
}

</mosaic_0001>

<bundles_post_ra>
// kernel: basic_conv3x3.1
= control target key start
LH: loop header
LB: loop body
LE: loop exit
PB: predicated region body
PF: predicated region fallthrough
CT: control target
= control target key end

     0   :  { %s670_s15 = smov 0   ;;  %s774_s0 = inlined_call_operand.vmem [shape: bf16[2,9,9,16], index: 0, kind: input, shape index: {}]   ;;  %s775_s1 = inlined_call_operand.vmem [shape: bf16[4,16,8], index: 1, kind: input, shape index: {}]   ;;  %s776_s2 = inlined_call_operand.vmem [shape: f32[1,8], index: 2, kind: input, shape index: {}]   ;;  %s777_s3 = inlined_call_operand.vmem [shape: f32[1,8], index: 3, kind: input, shape index: {}]   ;;  %s778_s4 = inlined_call_operand.vmem [shape: f32[2,8,8,8], index: 4, kind: output, shape index: {}]  }
   0x1 LB: > { %s538_s16 = sadd.s32 4294967295, %s637_s15   ;;  %p542_p0 = scmp.ge.s32.totalorder %s637_s15, 1  ;;  %s637_s15 = sphi %s670_s15, %s14_s15  }
   0x2   : > { %p162_p1 = scmp.lt.s32.totalorder %s637_s15, 3 }
   0x4   : > { %p163_p2 = pnand %p542_p0, %p162_p1 }
   0x5   : > { %p188_p3 = scmp.lt.s32.totalorder (!%p163_p2), %s538_s16, 1  ;;  %s738_s21 = smov (!%p163_p2), 0  }
   0x6   : > { %166 = sbr.rel (%p163_p2) target bundleno = 240 (0xf0), region = 36 }
   0xb   : > { %v681_v0 = vld [vmem:[%s776_s2] ss:$0 sm:$0xff]  ;;  %v696_v3 = vld [vmem:[%s775_s1 + $0x4] sm:$0xf]  ;;  %v701_v4 = vld [vmem:[%s775_s1 + $0x8] sm:$0xf] }
   0xc   : > { %v686_v1 = vld [vmem:[%s777_s3] ss:$0 sm:$0xff]  ;;  %s780_s16 = smov (!%p188_p3, %s538_s16), 1  ;;  %v706_v5 = vld [vmem:[%s775_s1 + $0xc] sm:$0xf] }
   0xd   : > { %v691_v2 = vld [vmem:[%s775_s1] sm:$0xf]  ;;  %v711_v6 = vld [vmem:[%s775_s1 + $0x10] sm:$0xf]  ;;  %v716_v7 = vld [vmem:[%s775_s1 + $0x14] sm:$0xf] }
   0xe   : > { %v721_v8 = vld [vmem:[%s775_s1 + $0x18] sm:$0xf]  ;;  %v726_v9 = vld [vmem:[%s775_s1 + $0x1c] sm:$0xf]  ;;  %s606_s11 = smul.u32 72, %s780_s16  ;;  %s572_s12 = sshll.u32 %s780_s16, 6 }
   0xf   : > { %s731_s17 = scalar_lea.vmem %s778_s4, %s572_s12 }
  0x10   : > { %s736_s20 = scalar_lea.vmem %s774_s0, %s606_s11 }
  0x11 LB: >> { %v560_v10 = vcombine.low %v691_v2, %v696_v3  ;;  %v558_v11 = vcombine.low %v701_v4, %v706_v5  ;;  %v643_v12 = vmov 0.0   ;;  %vm644_vm0 = vmmov 0   ;;  %s573_s16 = sshll.u32 %s641_s21, 3  ;;  %s217_s21 = sadd.s32 1, %s641_s21   ;;  %s641_s21 = sphi %s738_s21, %s217_s21  }
  0x12   : >> { %588 = vmatprep.subr.bf16.mxu1 %v643_v12  ;;  %582 = vmatprep.subr.bf16.mxu0 %v643_v12  ;;  %vm247_vm1 = vcmask 130048   ;;  %v565_v13 = vcombine.low %v721_v8, %v726_v9  ;;  %s220_s22 = scalar_lea.vmem %s736_s20, %s573_s16  ;;  %v562_v25 = vcombine.low %v711_v6, %v716_v7  ;;  %s468_s23 = scalar_lea.vmem %s731_s17, %s573_s16  ;;  %vm469_vm2 = vcmask 64512  }
  0x13   : >> { %589 = vmatpush3.bf16.msra.mxu1 %v560_v10  ;;  %590 = vmatprep.mubr.msk.bf16.mxu1 %vm644_vm0, %v643_v12  ;;  %v221_v14 = vld [vmem:[%s220_s22] sm:$0xf]  ;;  %v222_v15 = vld [vmem:[%s220_s22 + $0x4] sm:$0x1]  ;;  %v555_v16 = vld [vmem:[%s220_s22 + $0x8] sm:$0xf] }
  0x14   : >> { %583 = vmatpush3.bf16.msra.mxu0 %v558_v11  ;;  %584 = vmatprep.mubr.msk.bf16.mxu0 %vm644_vm0, %v643_v12  ;;  %v556_v17 = vld [vmem:[%s220_s22 + $0xc] sm:$0x1]  ;;  %v557_v18 = vcombine.low %v221_v14, %v222_v15  ;;  %p214_p4 = scmp.ge.s32.totalorder %s217_s21, 8  }
  0x15   : >> { %594 = vmatprep.subr.bf16.mxu0 %v643_v12  ;;  %600 = vmatprep.subr.bf16.mxu1 %v643_v12  ;;  %v564_v19 = vcombine.low %v555_v16, %v556_v17 }
  0x16   : >> { %591 = vmatmul.mubr.msk.bf16.vlgmr.msra.gmra.mxu1 %vm247_vm1, %v221_v14  ;;  %v235_v20 = vshrl.u32 %v557_v18, 16  ;;  %v237_v21 = vshll.u32 %v557_v18, 16 }
  0x17   : >> { %601 = vmatpush3.bf16.msra.mxu1 %v565_v13  ;;  %602 = vmatprep.mubr.msk.bf16.mxu1 %vm644_vm0, %v643_v12  ;;  %v396_v22 = vshrl.u32 %v564_v19, 16  ;;  %v398_v23 = vshll.u32 %v564_v19, 16 }
  0x18   : >> { %v239_v24 = vrot.slane %v237_v21, 1 }
  0x19   : >> { %v400_v26 = vrot.slane %v398_v23, 1 }
  0x1a   : >> { %v240_v27 = vor.u32 %v239_v24, %v235_v20 }
  0x1b   : >> { %v401_v28 = vor.u32 %v400_v26, %v396_v22 }
  0x1c   : >> { %585 = vmatmul.mubr.msk.bf16.vlgmr.msra.gmra.mxu0 %vm247_vm1, %v240_v27 }
  0x1d   : >> { %595 = vmatpush3.bf16.msra.mxu0 %v562_v25  ;;  %596 = vmatprep.mubr.msk.bf16.mxu0 %vm644_vm0, %v643_v12 }
  0x1e   : >> { %603 = vmatmul.mubr.msk.bf16.vlgmr.msra.gmra.mxu1 %vm247_vm1, %v401_v28 }
  0x24   : >> { %597 = vmatmul.mubr.msk.bf16.vlgmr.msra.gmra.mxu0 %vm247_vm1, %v555_v16 }
  0xd6   : >> { %v334_v29 = vpop.f32.mrf.mxu1 }
  0xd8   : >> { %v592_v30 = vpop.f32.mrf.mxu1 }
  0xda   : >> { %v337_v31 = vpop.f32.mrf.mxu1 }
  0xdc   : >> { %v593_v32 = vpop.f32.mrf.mxu1  ;;  %v285_v33 = vpop.f32.mrf.mxu0 }
  0xdd   : >> { %v335_v40 = vadd.f32 %v334_v29, %v285_v33 }
  0xde   : >> { %v445_v34 = vpop.f32.mrf.mxu1  ;;  %v586_v35 = vpop.f32.mrf.mxu0 }
  0xe0   : >> { %v604_v36 = vpop.f32.mrf.mxu1  ;;  %v288_v37 = vpop.f32.mrf.mxu0 }
  0xe2   : >> { %v448_v38 = vpop.f32.mrf.mxu1  ;;  %v587_v39 = vpop.f32.mrf.mxu0 }
  0xe4   : >> { %v605_v41 = vpop.f32.mrf.mxu1  ;;  %v383_v42 = vpop.f32.mrf.mxu0 }
  0xe5   : >> { %v389_v43 = vadd.f32 %v383_v42, %v335_v40 }
  0xe6   : >> { %v598_v44 = vpop.f32.mrf.mxu0 }
  0xe7   : >> { %v451_v45 = vadd.f32 %v445_v34, %v389_v43 }
  0xe8   : >> { %v386_v46 = vpop.f32.mrf.mxu0 }
  0xe9   : >> { %v458_v47 = vmul.f32 %v681_v0, %v451_v45 }
  0xea   : >> { %v599_v48 = vpop.f32.mrf.mxu0 }
  0xeb   : >> { %v465_v49 = vadd.f32 %v686_v1, %v458_v47  ;;  %216 = sbr.rel (!%p214_p4) target bundleno = 17 (0x11), region = 79 }
  0xed   : >> { %v466_v50 = vmax.f32 %v465_v49, 0.0 }
  0xef   : >> { %470 = vst.msk [vmem:[%s468_s23] sm:$0xff] %vm469_vm2, %v466_v50 }
  0xf0 PF: > { %s14_s15 = sadd.s32 1, %s637_s15  }
  0xf1   : > { %p11_p5 = scmp.ge.s32.totalorder %s14_s15, 4  }
  0xf3   :  { %13 = sbr.rel (!%p11_p5) target bundleno = 1 (0x1), region = 90 }

</bundles_post_ra>
